<compile_context>
chip_gen: v6e
topology: v6e:2x2x1
jax: 0.10.0
libtpu: 0.0.40
codegen_flags: <defaults>
</compile_context>

<pallas_src>
import jax
import jax.numpy as jnp
from jax.experimental import pallas as pl
from jax.experimental.pallas import tpu as pltpu


def _round_up(x, m):
    return ((x + m - 1) // m) * m


# ---------------------------------------------------------------------------
# Kernels (online softmax over the N grid axis; scratch = running max/num/den)
# ---------------------------------------------------------------------------

def _psp_kernel_nomask(temp_ref, x_ref, o_ref, m_sc, num_sc, den_sc):
    # temp_ref: SMEM (1,) f32 ; x_ref: VMEM (TB, TN, TD) ; o_ref: VMEM (TB, TD)
    # m_sc / num_sc / den_sc: VMEM (TB, TD) f32 scratch accumulators.
    n_i = pl.program_id(2)

    @pl.when(n_i == 0)
    def _():
        m_sc[...] = jnp.full_like(m_sc, -jnp.inf)
        num_sc[...] = jnp.zeros_like(num_sc)
        den_sc[...] = jnp.zeros_like(den_sc)

    t = temp_ref[0]
    x = x_ref[...].astype(jnp.float32)            # upcast in-register; f32 accumulation
    h = t * x
    m_prev = m_sc[...]
    m_new = jnp.maximum(m_prev, jnp.max(h, axis=1))        # (TB, TD), XLU reduce over N
    alpha = jnp.exp(m_prev - m_new)                          # 0 at n_i == 0
    e = jnp.exp(h - m_new[:, None, :])
    num_sc[...] = alpha * num_sc[...] + jnp.sum(x * e, axis=1)
    den_sc[...] = alpha * den_sc[...] + jnp.sum(e, axis=1)
    m_sc[...] = m_new

    @pl.when(n_i == pl.num_programs(2) - 1)
    def _():
        # Exact divide: only TB*TD divides per block -> negligible cost, full accuracy.
        o_ref[...] = (num_sc[...] / den_sc[...]).astype(o_ref.dtype)


def _psp_kernel_masked(temp_ref, x_ref, m_ref, o_ref, m_sc, num_sc, den_sc):
    # m_ref: VMEM int8, either (TB, TN, TD) (elementwise mask) or (TB, TN, 1)
    # (per-token mask, lane-broadcast in-register).
    n_i = pl.program_id(2)

    @pl.when(n_i == 0)
    def _():
        m_sc[...] = jnp.full_like(m_sc, -jnp.inf)
        num_sc[...] = jnp.zeros_like(num_sc)
        den_sc[...] = jnp.zeros_like(den_sc)

    t = temp_ref[0]
    x = x_ref[...].astype(jnp.float32)
    # Single select (no bias add): h[~mask] = -inf.
    h = jnp.where(m_ref[...] != 0, t * x, -jnp.inf)
    m_prev = m_sc[...]
    m_new = jnp.maximum(m_prev, jnp.max(h, axis=1))          # (TB, TD)
    # Guard: a column fully masked *so far* keeps m_new == -inf; use a finite
    # stand-in so exp() stays NaN-free and accumulators remain exactly zero.
    safe_m = jnp.where(m_new == -jnp.inf, 0.0, m_new)
    alpha = jnp.exp(m_prev - safe_m)
    e = jnp.exp(h - safe_m[:, None, :])
    num_sc[...] = alpha * num_sc[...] + jnp.sum(x * e, axis=1)
    den_sc[...] = alpha * den_sc[...] + jnp.sum(e, axis=1)
    m_sc[...] = m_new

    @pl.when(n_i == pl.num_programs(2) - 1)
    def _():
        # NOTE: a (batch, feature) column masked across all of N yields 0/0 = NaN,
        # matching the PyTorch reference (softmax over all -inf).
        o_ref[...] = (num_sc[...] / den_sc[...]).astype(o_ref.dtype)


# ---------------------------------------------------------------------------
# Wrapper: tiling, chip-aware defaults, honest VMEM accounting
# ---------------------------------------------------------------------------

def _is_v7_chip():
    try:
        kind = jax.devices()[0].device_kind.lower()
    except Exception:
        kind = ""
    return ("v7" in kind) or ("7x" in kind)


def _choose_tiles(B, N, D, pe, target):
    """Pick (TB, TN, TD) so one streamed input block is ~target bytes while
    respecting TPU block constraints (last-two block dims multiples of (8, 128)
    or equal to the full array dims). TN always divides N exactly so the
    reduction never sees padded garbage."""
    # Feature axis: multiples of 128 that divide D, else full D.
    if D % 128 == 0 and N * D * pe > target:
        td = max(128, (target // (N * 128 * pe)) * 128)
        td = min(td, D)
        while D % td:
            td -= 128
    else:
        td = D

    # Sequence axis: tile only when even the smallest batch block blows budget.
    tb_min = B if B <= 8 else 8
    tn = N
    if tb_min * N * td * pe > target and N > 8 and N % 8 == 0:
        tn = min(N, max(8, (target // (tb_min * td * pe) // 8) * 8))
        while N % tn:           # N % 8 == 0 -> terminates at 8
            tn -= 8

    # Batch axis: fill the remaining budget; multiple of 8 (or full B) so the
    # [B, D] output block stays sublane-legal.
    tb = target // max(1, tn * td * pe)
    if tb >= B or B <= 8:
        tb = B
    else:
        tb = min(B, max(8, (tb // 8) * 8))
    return int(tb), int(tn), int(td)


def parametric_softmax_pool(x, temperature, mask=None, *,
                            target_block_bytes=None,
                            vmem_limit_bytes=None):
    """Pools x [B, N, D] over axis=1 -> [B, D].

    mask: optional bool/int array of shape [B, N, D] (PyTorch elementwise mask)
          or [B, N] (per-token). temperature: scalar.
    """
    x = jnp.asarray(x)                            # native dtype in HBM (no f32 upcast)
    B, N, D = x.shape
    out_dtype = jnp.result_type(x.dtype, jnp.float32)   # f32 temperature promotes (torch-like)
    temp = jnp.asarray(temperature, dtype=jnp.float32).reshape((1,))

    m = None
    token_mask = False
    if mask is not None:
        m = jnp.asarray(mask)
        if m.ndim == 2:                           # per-token [B, N] -> [B, N, 1]
            token_mask = True
            m = m[:, :, None]
        m = m.astype(jnp.int8)                    # 1 byte/elem in HBM instead of 4

    is_v7 = _is_v7_chip()
    if target_block_bytes is None:
        # 128 MiB-VMEM parts (v5e/v6e) take bigger blocks toward the HBM roofline;
        # v7x (64 MiB VMEM) keeps ~2 MiB streamed blocks.
        target_block_bytes = (2 << 20) if is_v7 else (6 << 20)

    elem_mask = (m is not None) and (not token_mask)
    pe = x.dtype.itemsize + (1 if elem_mask else 0)      # HBM bytes per (n, d) element
    tb, tn, td = _choose_tiles(B, N, D, pe, target_block_bytes)

    # v7x megacore: make sure the ("parallel","parallel") axes have >= 2 blocks
    # so both TensorCores get work when the whole problem fits one block.
    if is_v7 and pl.cdiv(B, tb) * pl.cdiv(D, td) == 1:
        if D % 256 == 0:
            td = D // 2
        elif B >= 16:
            tb = max(8, ((B // 2) // 8) * 8)

    grid = (pl.cdiv(B, tb), pl.cdiv(D, td), pl.cdiv(N, tn))

    in_specs = [pl.BlockSpec((tb, tn, td), lambda b, d, n, t_ref: (b, n, d))]
    operands = [temp, x]
    if m is None:
        kernel = _psp_kernel_nomask
    else:
        kernel = _psp_kernel_masked
        if token_mask:
            in_specs.append(pl.BlockSpec((tb, tn, 1), lambda b, d, n, t_ref: (b, n, 0)))
        else:
            in_specs.append(pl.BlockSpec((tb, tn, td), lambda b, d, n, t_ref: (b, n, d)))
        operands.append(m)

    if vmem_limit_bytes is None:
        # Honest accounting: double-buffered streamed blocks + whole-block f32
        # temporaries the body materializes (x_f32, h, e, x*e, mask select)
        # + lane/sublane-padded per-token mask tile + scratch accumulators.
        td_pad = _round_up(td, 128)
        tn_pad = _round_up(tn, 8)
        tb_pad = _round_up(tb, 8)
        blk_pad = tb * tn_pad * td_pad
        x_blk = blk_pad * x.dtype.itemsize
        if m is None:
            m_blk = 0
        elif token_mask:
            m_blk = tb * _round_up(tn, 32) * 128          # int8 (tb, tn, 1) tile padding
        else:
            m_blk = blk_pad                               # int8
        o_blk = tb_pad * td_pad * jnp.dtype(out_dtype).itemsize
        temps = 5 * blk_pad * 4                           # live f32 whole-block temporaries
        scr = 3 * tb_pad * td_pad * 4                     # m/num/den scratch
        est = 2 * (x_blk + m_blk + o_blk) + temps + scr + (2 << 20)
        cap = (60 << 20) if is_v7 else (120 << 20)
        vmem_limit_bytes = int(min(max(32 << 20, est), cap))

    out = pl.pallas_call(
        kernel,
        out_shape=jax.ShapeDtypeStruct((B, D), out_dtype),
        grid_spec=pltpu.PrefetchScalarGridSpec(
            num_scalar_prefetch=1,
            grid=grid,
            in_specs=in_specs,
            out_specs=pl.BlockSpec((tb, td), lambda b, d, n, t_ref: (b, d)),
            scratch_shapes=[pltpu.VMEM((tb, td), jnp.float32)] * 3,
        ),
        compiler_params=pltpu.CompilerParams(
            dimension_semantics=("parallel", "parallel", "arbitrary"),
            vmem_limit_bytes=int(vmem_limit_bytes),
        ),
    )(*operands)
    return out


# ---------------------------------------------------------------------------
# Reference + tests
# ---------------------------------------------------------------------------

def _reference(x, temperature, mask=None):
    x = jnp.asarray(x, jnp.float32)
    h = jnp.float32(temperature) * x
    if mask is not None:
        mask = jnp.asarray(mask).astype(bool)
        if mask.ndim == 2:
            mask = mask[:, :, None]
        h = jnp.where(jnp.broadcast_to(mask, x.shape), h, -jnp.inf)
    sm = jax.nn.softmax(h, axis=1)
    return jnp.sum(x * sm, axis=1)


if __name__ == "__main__":
    key = jax.random.PRNGKey(0)
    k1, k2, k3, k4, k5 = jax.random.split(key, 5)

    TOL = dict(atol=1e-4, rtol=1e-4)

    # --- small case matching the module: batch=2, seq=8, hidden=32 ---
    B, N, D = 2, 8, 32
    x = jax.random.normal(k1, (B, N, D), dtype=jnp.float32)
    temperature = jnp.float32(1.0)   # temperature_init = 1

    # elementwise [B, N, D] mask (PyTorch h[~mask] semantics); keep >=1 entry
    # per (batch, feature) column so softmax denominators stay finite.
    mask = jax.random.uniform(k2, (B, N, D)) > 0.3
    mask = mask.at[:, 0, :].set(True)

    out = jax.block_until_ready(parametric_softmax_pool(x, temperature, mask))
    assert out.shape == (B, D)
    assert jnp.allclose(out, _reference(x, temperature, mask), **TOL)

    # mask=None fast path (no ones() streamed from HBM)
    out_nm = jax.block_until_ready(parametric_softmax_pool(x, temperature))
    assert jnp.allclose(out_nm, _reference(x, temperature), **TOL)

    # per-token [B, N] mask path (broadcast in-kernel; ~D x fewer mask bytes)
    mask_tok = jax.random.uniform(k3, (B, N)) > 0.3
    mask_tok = mask_tok.at[:, 0].set(True)
    out_tok = jax.block_until_ready(parametric_softmax_pool(x, temperature, mask_tok))
    assert jnp.allclose(out_tok, _reference(x, temperature, mask_tok), **TOL)

    # bf16 input stays bf16 in HBM; accumulation is f32 in-kernel
    x_bf16 = x.astype(jnp.bfloat16)
    out_bf = jax.block_until_ready(parametric_softmax_pool(x_bf16, temperature, mask))
    assert out_bf.dtype == jnp.float32
    assert jnp.allclose(out_bf, _reference(x_bf16, temperature, mask),
                        atol=2e-2, rtol=2e-2)

    # multi-block tiling path: forces TB/TD tiling AND the online-softmax N axis
    # (grid (2, 2, 8) with these sizes), including a first N-tile that is fully
    # masked so the running-max guard is exercised.
    B2, N2, D2 = 16, 64, 256
    x2 = jax.random.normal(k4, (B2, N2, D2), dtype=jnp.float32)
    mask2 = jax.random.uniform(k5, (B2, N2, D2)) > 0.3
    mask2 = mask2.at[:, 0:8, :].set(False)       # first N-block fully masked
    mask2 = mask2.at[:, 8, :].set(True)          # but every column has a kept entry
    out2 = jax.block_until_ready(
        parametric_softmax_pool(x2, temperature, mask2, target_block_bytes=64 * 1024))
    assert out2.shape == (B2, D2)
    assert jnp.allclose(out2, _reference(x2, temperature, mask2), **TOL)

    # same multi-block shape, no mask (online softmax, nomask kernel)
    out2_nm = jax.block_until_ready(
        parametric_softmax_pool(x2, temperature, target_block_bytes=64 * 1024))
    assert jnp.allclose(out2_nm, _reference(x2, temperature), **TOL)

    print("KERNEL_OK")
</pallas_src>

<mosaic_0001>
module attributes {stable_mosaic.version = 11 : i64} {
  func.func @_psp_kernel_masked(%arg0: i32, %arg1: i32, %arg2: i32, %arg3: memref<1xf32, #tpu.memory_space<smem>>, %arg4: memref<2x8x32xf32, #tpu.memory_space<vmem>>, %arg5: memref<2x8x32xi8, #tpu.memory_space<vmem>>, %arg6: memref<2x32xf32, #tpu.memory_space<vmem>>, %arg7: memref<2x32xf32, #tpu.memory_space<vmem>>, %arg8: memref<2x32xf32, #tpu.memory_space<vmem>>, %arg9: memref<2x32xf32, #tpu.memory_space<vmem>>) attributes {dimension_semantics = [#tpu.dimension_semantics<parallel>, #tpu.dimension_semantics<parallel>, #tpu.dimension_semantics<arbitrary>], iteration_bounds = array<i64: 1, 1, 1>, scalar_prefetch = 1 : i64, scratch_operands = 3 : i64, tpu.core_type = #tpu.core_type<tc>, window_params = [{transform_indices = @transform_0, window_bounds = array<i64: 2, 8, 32>}, {transform_indices = @transform_1, window_bounds = array<i64: 2, 8, 32>}, {transform_indices = @transform_2, window_bounds = array<i64: 2, 32>}]} {
    %c0_i32 = arith.constant 0 : i32
    %0 = arith.cmpi eq, %arg2, %c0_i32 : i32
    %1 = arith.extui %0 : i1 to i32
    %c0_i32_0 = arith.constant 0 : i32
    %2 = arith.cmpi ne, %1, %c0_i32_0 : i32
    scf.if %2 {
      %cst_26 = arith.constant 0xFF800000 : f32
      %40 = vector.broadcast %cst_26 : f32 to vector<2x32xf32>
      %c0_27 = arith.constant 0 : index
      %c0_28 = arith.constant 0 : index
      %41 = vector.load %arg7[%c0_27, %c0_28] : memref<2x32xf32, #tpu.memory_space<vmem>>, vector<2x32xf32>
      tpu.vector_store %arg7[%c0_27, %c0_28], %40 {strides = array<i32>} : memref<2x32xf32, #tpu.memory_space<vmem>>, vector<2x32xf32>,
      %cst_29 = arith.constant 0.000000e+00 : f32
      %42 = vector.broadcast %cst_29 : f32 to vector<2x32xf32>
      %c0_30 = arith.constant 0 : index
      %c0_31 = arith.constant 0 : index
      %43 = vector.load %arg8[%c0_30, %c0_31] : memref<2x32xf32, #tpu.memory_space<vmem>>, vector<2x32xf32>
      tpu.vector_store %arg8[%c0_30, %c0_31], %42 {strides = array<i32>} : memref<2x32xf32, #tpu.memory_space<vmem>>, vector<2x32xf32>,
      %cst_32 = arith.constant 0.000000e+00 : f32
      %44 = vector.broadcast %cst_32 : f32 to vector<2x32xf32>
      %c0_33 = arith.constant 0 : index
      %c0_34 = arith.constant 0 : index
      %45 = vector.load %arg9[%c0_33, %c0_34] : memref<2x32xf32, #tpu.memory_space<vmem>>, vector<2x32xf32>
      tpu.vector_store %arg9[%c0_33, %c0_34], %44 {strides = array<i32>} : memref<2x32xf32, #tpu.memory_space<vmem>>, vector<2x32xf32>,
    } else {
    }
    %c0 = arith.constant 0 : index
    %3 = memref.load %arg3[%c0] : memref<1xf32, #tpu.memory_space<smem>>
    %c0_1 = arith.constant 0 : index
    %c0_2 = arith.constant 0 : index
    %c0_3 = arith.constant 0 : index
    %4 = vector.load %arg4[%c0_1, %c0_2, %c0_3] : memref<2x8x32xf32, #tpu.memory_space<vmem>>, vector<2x8x32xf32>
    %c0_4 = arith.constant 0 : index
    %c0_5 = arith.constant 0 : index
    %c0_6 = arith.constant 0 : index
    %5 = vector.load %arg5[%c0_4, %c0_5, %c0_6] : memref<2x8x32xi8, #tpu.memory_space<vmem>>, vector<2x8x32xi8>
    %c0_i8 = arith.constant 0 : i8
    %6 = vector.broadcast %c0_i8 : i8 to vector<2x8x32xi8>
    %7 = arith.cmpi ne, %5, %6 : vector<2x8x32xi8>
    %8 = vector.broadcast %3 : f32 to vector<2x8x32xf32>
    %9 = arith.mulf %8, %4 : vector<2x8x32xf32>
    %cst = arith.constant 0xFF800000 : f32
    %10 = vector.broadcast %cst : f32 to vector<2x8x32xf32>
    %11 = arith.select %7, %9, %10 : vector<2x8x32xi1>, vector<2x8x32xf32>
    %c0_7 = arith.constant 0 : index
    %c0_8 = arith.constant 0 : index
    %12 = vector.load %arg7[%c0_7, %c0_8] : memref<2x32xf32, #tpu.memory_space<vmem>>, vector<2x32xf32>
    %cst_9 = arith.constant dense<0xFF800000> : vector<2x32xf32>
    %13 = vector.multi_reduction <maximumf>, %11, %cst_9 [1] : vector<2x8x32xf32> to vector<2x32xf32>
    %14 = arith.maximumf %12, %13 : vector<2x32xf32>
    %cst_10 = arith.constant 0xFF800000 : f32
    %15 = vector.broadcast %cst_10 : f32 to vector<2x32xf32>
    %16 = arith.cmpf oeq, %14, %15 : vector<2x32xf32>
    %cst_11 = arith.constant 0.000000e+00 : f32
    %17 = vector.broadcast %cst_11 : f32 to vector<2x32xf32>
    %18 = arith.select %16, %17, %14 : vector<2x32xi1>, vector<2x32xf32>
    %19 = arith.subf %12, %18 : vector<2x32xf32>
    %20 = math.exp %19 : vector<2x32xf32>
    %21 = vector.shape_cast %18 : vector<2x32xf32> to vector<2x1x32xf32>
    %22 = vector.broadcast %21 : vector<2x1x32xf32> to vector<2x8x32xf32>
    %23 = arith.subf %11, %22 : vector<2x8x32xf32>
    %24 = math.exp %23 : vector<2x8x32xf32>
    %c0_12 = arith.constant 0 : index
    %c0_13 = arith.constant 0 : index
    %25 = vector.load %arg8[%c0_12, %c0_13] : memref<2x32xf32, #tpu.memory_space<vmem>>, vector<2x32xf32>
    %26 = arith.mulf %20, %25 : vector<2x32xf32>
    %27 = arith.mulf %4, %24 : vector<2x8x32xf32>
    %cst_14 = arith.constant dense<0.000000e+00> : vector<2x32xf32>
    %28 = vector.multi_reduction <add>, %27, %cst_14 [1] : vector<2x8x32xf32> to vector<2x32xf32>
    %29 = arith.addf %26, %28 : vector<2x32xf32>
    %c0_15 = arith.constant 0 : index
    %c0_16 = arith.constant 0 : index
    %30 = vector.load %arg8[%c0_15, %c0_16] : memref<2x32xf32, #tpu.memory_space<vmem>>, vector<2x32xf32>
    tpu.vector_store %arg8[%c0_15, %c0_16], %29 {strides = array<i32>} : memref<2x32xf32, #tpu.memory_space<vmem>>, vector<2x32xf32>,
    %c0_17 = arith.constant 0 : index
    %c0_18 = arith.constant 0 : index
    %31 = vector.load %arg9[%c0_17, %c0_18] : memref<2x32xf32, #tpu.memory_space<vmem>>, vector<2x32xf32>
    %32 = arith.mulf %20, %31 : vector<2x32xf32>
    %cst_19 = arith.constant dense<0.000000e+00> : vector<2x32xf32>
    %33 = vector.multi_reduction <add>, %24, %cst_19 [1] : vector<2x8x32xf32> to vector<2x32xf32>
    %34 = arith.addf %32, %33 : vector<2x32xf32>
    %c0_20 = arith.constant 0 : index
    %c0_21 = arith.constant 0 : index
    %35 = vector.load %arg9[%c0_20, %c0_21] : memref<2x32xf32, #tpu.memory_space<vmem>>, vector<2x32xf32>
    tpu.vector_store %arg9[%c0_20, %c0_21], %34 {strides = array<i32>} : memref<2x32xf32, #tpu.memory_space<vmem>>, vector<2x32xf32>,
    %c0_22 = arith.constant 0 : index
    %c0_23 = arith.constant 0 : index
    %36 = vector.load %arg7[%c0_22, %c0_23] : memref<2x32xf32, #tpu.memory_space<vmem>>, vector<2x32xf32>
    tpu.vector_store %arg7[%c0_22, %c0_23], %14 {strides = array<i32>} : memref<2x32xf32, #tpu.memory_space<vmem>>, vector<2x32xf32>,
    %c0_i32_24 = arith.constant 0 : i32
    %37 = arith.cmpi eq, %arg2, %c0_i32_24 : i32
    %38 = arith.extui %37 : i1 to i32
    %c0_i32_25 = arith.constant 0 : i32
    %39 = arith.cmpi ne, %38, %c0_i32_25 : i32
    scf.if %39 {
      %c0_26 = arith.constant 0 : index
      %c0_27 = arith.constant 0 : index
      %40 = vector.load %arg8[%c0_26, %c0_27] : memref<2x32xf32, #tpu.memory_space<vmem>>, vector<2x32xf32>
      %c0_28 = arith.constant 0 : index
      %c0_29 = arith.constant 0 : index
      %41 = vector.load %arg9[%c0_28, %c0_29] : memref<2x32xf32, #tpu.memory_space<vmem>>, vector<2x32xf32>
      %42 = arith.divf %40, %41 : vector<2x32xf32>
      %c0_30 = arith.constant 0 : index
      %c0_31 = arith.constant 0 : index
      %43 = vector.load %arg6[%c0_30, %c0_31] : memref<2x32xf32, #tpu.memory_space<vmem>>, vector<2x32xf32>
      tpu.vector_store %arg6[%c0_30, %c0_31], %42 {strides = array<i32>} : memref<2x32xf32, #tpu.memory_space<vmem>>, vector<2x32xf32>,
    } else {
    }
    return
  }
  func.func @transform_0(%arg0: i32, %arg1: i32, %arg2: i32, %arg3: memref<1xf32, #tpu.memory_space<smem>>) -> (i32, i32, i32) {
    %c0_i32 = arith.constant 0 : i32
    return %arg0, %arg2, %arg1 : i32, i32, i32
  }
  func.func @transform_1(%arg0: i32, %arg1: i32, %arg2: i32, %arg3: memref<1xf32, #tpu.memory_space<smem>>) -> (i32, i32, i32) {
    %c0_i32 = arith.constant 0 : i32
    return %arg0, %arg2, %arg1 : i32, i32, i32
  }
  func.func @transform_2(%arg0: i32, %arg1: i32, %arg2: i32, %arg3: memref<1xf32, #tpu.memory_space<smem>>) -> (i32, i32) {
    %c0_i32 = arith.constant 0 : i32
    return %arg0, %arg1 : i32, i32
  }
}

</mosaic_0001>

<bundles_post_ra>
// kernel: tpu_custom_call.1
= control target key start
LH: loop header
LB: loop body
LE: loop exit
PB: predicated region body
PF: predicated region fallthrough
CT: control target
= control target key end

     0   :  { %9 = vsyncpa [#allocation8], 0  ;;  %s356_s0 = inlined_call_operand.<no memory space> [shape: f32[1], index: 0, kind: input, shape index: {}]   ;;  %s357_s1 = inlined_call_operand.hbm [shape: f32[2,8,32], index: 1, kind: input, shape index: {}]   ;;  %s358_s2 = inlined_call_operand.hbm [shape: s8[2,8,32], index: 2, kind: input, shape index: {}]   ;;  %s359_s3 = inlined_call_operand.hbm [shape: f32[2,32], index: 3, kind: output, shape index: {}]  }
   0x1   :  { %10 = vsyncpa [#allocation11], 0 }
   0x2   :  { %11 = vsyncpa [#allocation9], 0  ;;  %s293_s12 = smov [#allocation7]  }
   0x3   :  { %s17_s13 = sshll.u32 %s293_s12, 4  ;;  %s18_s13 = int_to_ptr.vmem [resolvable:$true] %s17_s13 }
   0x4   :  { %s235_s14 = scalar_lea.vmem %s18_s13, 256  ;;  %p240_p1 = scmp.lt.s32.totalorder %s18_s13, %s18_s13 }
   0x5   :  { %p236_p0 = scmp.ne.s32.totalorder %s18_s13, %s235_s14  ;;  %p241_p2 = scmp.lt.s32.totalorder %s235_s14, %s235_s14 }
   0x7   :  { %p242_p3 = por %p241_p2, %p240_p1 }
   0x9   :  { %p243_p4 = pnand %p242_p3, %p236_p0 }
   0xb   :  { %246 = shalt.err (!%p243_p4)
}
   0xc   :  { %s294_s15 = smov 128   ;;  %s295_s16 = smov 8  }
   0xd   :  { %23 = dma.hbm_to_vmem [thread:$0]  %s357_s1, 256, %s18_s13, [#allocation8], %s294_s15, %s294_s15, %s295_s16  }
   0xe   :  { %s296_s19 = smov [#allocation10]  }
   0xf   :  { %s29_s20 = sshll.u32 %s296_s19, 4  ;;  %s30_s20 = int_to_ptr.vmem [resolvable:$true] %s29_s20 }
  0x10   :  { %s255_s21 = scalar_lea.vmem %s30_s20, 64  ;;  %p260_p6 = scmp.lt.s32.totalorder %s30_s20, %s30_s20 }
  0x11   :  { %p256_p5 = scmp.ne.s32.totalorder %s30_s20, %s255_s21  ;;  %p261_p7 = scmp.lt.s32.totalorder %s255_s21, %s255_s21 }
  0x13   :  { %p262_p8 = por %p261_p7, %p260_p6 }
  0x15   :  { %p263_p9 = pnand %p262_p8, %p256_p5 }
  0x17   :  { %266 = shalt.err (!%p263_p9)
}
  0x18   :  { %s297_s22 = smov 32   ;;  %s298_s23 = smov 2  }
  0x19   :  { %35 = dma.hbm_to_vmem [thread:$0]  %s358_s2, 64, %s30_s20, [#allocation11], %s297_s22, %s297_s22, %s298_s23  }
  0x1a   :  { %287 = dma.done.wait [#allocation8], 256  }
  0x1b   :  { %288 = vsyncadd [#allocation8], 4294967040 }
  0x1c   :  { %289 = dma.done.wait [#allocation11], 64  }
  0x1d   :  { %290 = vsyncadd [#allocation11], 4294967232  ;;  %vm48_vm0 = vcmask 254976   ;;  %v299_v0 = vmov -inf   ;;  %v300_v1 = vmov 0.0   ;;  %v59_v2 = vstv %s356_s0  ;;  %v53_v3 = vld [vmem:[#allocation7] sm:$0xff] }
  0x1e   :  { %49 = vst.msk [vmem:[#allocation2] sm:$0x3] %vm48_vm0, %v299_v0  ;;  %50 = vst.msk [vmem:[#allocation3] sm:$0x3] %vm48_vm0, %v300_v1  ;;  %v336_v4 = vld [vmem:[#allocation7 + $0x8] sm:$0xff]  ;;  %v60_v7 = vmul.f32 %v59_v2, %v53_v3  ;;  %v301_v8 = vmov 0   ;;  %v101_v27 = vlaneseq }
  0x1f   :  { %51 = vst.msk [vmem:[#allocation4] sm:$0x3] %vm48_vm0, %v300_v1  ;;  %v55_v5 = vld [vmem:[#allocation10] sm:$0x3]  ;;  %v56_v6 = vld [vmem:[#allocation10 + $0x2] sm:$0x3]  ;;  %v61_v10 = vmul.f32 %v59_v2, %v336_v4 }
  0x20   :  { %vm57_vm1 = vnez %v55_v5  ;;  %vm58_vm2 = vnez %v56_v6  ;;  %vm71_vm3 = vcmask 261120   ;;  %v302_v25 = vmov 1966171168   ;;  %s303_s0 = smov [#allocation12]  }
  0x21   :  { %v62_v9 = vsel %vm57_vm1, 16843009, %v301_v8  ;;  %v63_v11 = vsel %vm58_vm2, 16843009, %v301_v8  ;;  %v99_v26 = vunpack.c.l.s4 %v302_v25  ;;  %vm88_vm6 = vcmask 1041409   ;;  %s198_s2 = sshll.u32 %s303_s0, 4  ;;  %s199_s2 = int_to_ptr.vmem [resolvable:$true] %s198_s2 }
  0x22   :  { %v64_v12 = vunpack.c.0.s8 %v62_v9  ;;  %v65_v13 = vunpack.c.0.s8 %v63_v11  ;;  %v102_v33 = vshrl.u32 %v101_v27, 7  ;;  %s267_s27 = scalar_lea.vmem %s199_s2, 32  ;;  %p272_p11 = scmp.lt.s32.totalorder %s199_s2, %s199_s2 }
  0x23   :  { %v100_v32 = vunpack.c.0.s8 %v99_v26  ;;  %p268_p10 = scmp.ne.s32.totalorder %s199_s2, %s267_s27  ;;  %p273_p12 = scmp.lt.s32.totalorder %s267_s27, %s267_s27 }
  0x24   :  { %vm66_vm4 = vcmp.ne.s32.totalorder %v64_v12, 0  ;;  %vm67_vm5 = vcmp.ne.s32.totalorder %v65_v13, 0  ;;  %v122_v41 = vsub.s32 0, %v102_v33 }
  0x25   :  { %v68_v14 = vsel %vm66_vm4, %v60_v7, -inf  ;;  %v69_v15 = vsel %vm67_vm5, %v61_v10, -inf  ;;  %v70_v34 = vld [vmem:[#allocation2] sm:$0x3]  ;;  %v103_v38 = vsub.s32 %v100_v32, %v102_v33  ;;  %p274_p13 = por %p273_p12, %p272_p11 }
  0x26   :  { %v72_v16 = vsel %vm71_vm3, %v68_v14, -inf  ;;  %v79_v18 = vsel %vm71_vm3, %v69_v15, -inf }
  0x27   :  { %v73_v17 = vrot.slane %v72_v16, 4  ;;  %v80_v19 = vrot.slane %v79_v18, 4  ;;  %p275_p0 = pnand %p274_p13, %p268_p10 }
  0x29   :  { %v74_v20 = vmax.f32 %v72_v16, %v73_v17  ;;  %v81_v21 = vmax.f32 %v79_v18, %v80_v19 }
  0x2b   :  { %v75_v22 = vrot.slane %v74_v20, 2  ;;  %v82_v23 = vrot.slane %v81_v21, 2 }
  0x2d   :  { %v76_v24 = vmax.f32 %v74_v20, %v75_v22  ;;  %v83_v28 = vmax.f32 %v81_v21, %v82_v23  ;;  %v136_v20 = vld [vmem:[#allocation3] sm:$0x3] }
  0x2f   :  { %v77_v29 = vrot.slane %v76_v24, 1  ;;  %v84_v30 = vrot.slane %v83_v28, 1 }
  0x31   :  { %v78_v31 = vmax.f32 %v76_v24, %v77_v29  ;;  %v85_v35 = vmax.f32 %v83_v28, %v84_v30 }
  0x33   :  { %v89_v36 = vsel %vm88_vm6, %v85_v35, %v78_v31 }
  0x34   :  { %v91_v37 = vmax.f32 %v70_v34, %v89_v36 }
  0x36   :  { %vm92_vm7 = vcmp.eq.f32.partialorder %v91_v37, -inf  ;;  %183 = vst.msk [vmem:[#allocation2] sm:$0x3] %vm48_vm0, %v91_v37 }
  0x37   :  { %v93_v39 = vsel %vm92_vm7, 0.0, %v91_v37 }
  0x38   :  { %v104_v40 = vrot.slane %v93_v39, %v103_v38  ;;  %v94_v51 = vsub.f32 %v70_v34, %v93_v39 }
  0x3a   :  { %v105_v42 = vcombine.high %v104_v40, %v104_v40  ;;  %v112_v43 = vrot.slane %v104_v40, %v103_v38  ;;  %v95_v52 = vmul.f32 1.442695, %v94_v51 }
  0x3c   :  { %v119_v44 = vrot.slane %v105_v42, %v103_v38  ;;  %v123_v45 = vrot.slane %v112_v43, %v122_v41 }
  0x3e   :  { %v127_v46 = vrot.slane %v119_v44, %v122_v41  ;;  %v130_v47 = vsub.f32 %v68_v14, %v123_v45  ;;  %v161_v14 = vld [vmem:[#allocation4] sm:$0x3] }
  0x40   :  { %v131_v48 = vsub.f32 %v69_v15, %v127_v46  ;;  %v132_v49 = vmul.f32 1.442695, %v130_v47 }
  0x42   :  { %219 = vpow2.f32 %v132_v49  ;;  %v134_v50 = vmul.f32 1.442695, %v131_v48 }
  0x44   :  { %221 = vpow2.f32 %v134_v50 }
  0x45   :  { %223 = vpow2.f32 %v95_v52 }
  0x4f   :  { %v220_v53 = vpop.eup %219 }
  0x50   :  { %v138_v54 = vmul.f32 %v220_v53, %v53_v3  ;;  %v163_v55 = vsel %vm71_vm3, %v220_v53, 0.0 }
  0x51   :  { %v222_v56 = vpop.eup %221  ;;  %v164_v57 = vrot.slane %v163_v55, 4 }
  0x52   :  { %v170_v58 = vsel %vm71_vm3, %v222_v56, 0.0  ;;  %v139_v59 = vmul.f32 %v222_v56, %v336_v4  ;;  %v140_v60 = vsel %vm71_vm3, %v138_v54, 0.0  ;;  %v224_v4 = vpop.eup %223 }
  0x53   :  { %v165_v61 = vadd.f32 %v164_v57, %v163_v55  ;;  %v171_v62 = vrot.slane %v170_v58, 4  ;;  %v141_v63 = vrot.slane %v140_v60, 4  ;;  %v162_v22 = vmul.f32 %v224_v4, %v161_v14 }
  0x54   :  { %v147_v0 = vsel %vm71_vm3, %v139_v59, 0.0  ;;  %v137_v27 = vmul.f32 %v224_v4, %v136_v20 }
  0x55   :  { %v166_v1 = vrot.slane %v165_v61, 2  ;;  %v172_v2 = vadd.f32 %v171_v62, %v170_v58  ;;  %v142_v5 = vadd.f32 %v141_v63, %v140_v60  ;;  %v148_v6 = vrot.slane %v147_v0, 4 }
  0x57   :  { %v167_v3 = vadd.f32 %v166_v1, %v165_v61  ;;  %v173_v7 = vrot.slane %v172_v2, 2  ;;  %v143_v8 = vrot.slane %v142_v5, 2  ;;  %v149_v9 = vadd.f32 %v148_v6, %v147_v0 }
  0x59   :  { %v168_v10 = vrot.slane %v167_v3, 1  ;;  %v174_v11 = vadd.f32 %v173_v7, %v172_v2  ;;  %v144_v12 = vadd.f32 %v143_v8, %v142_v5  ;;  %v150_v13 = vrot.slane %v149_v9, 2 }
  0x5b   :  { %v175_v15 = vrot.slane %v174_v11, 1  ;;  %v145_v16 = vrot.slane %v144_v12, 1  ;;  %v151_v17 = vadd.f32 %v150_v13, %v149_v9  ;;  %v169_v18 = vadd.f32 %v168_v10, %v167_v3 }
  0x5d   :  { %v176_v19 = vadd.f32 %v175_v15, %v174_v11  ;;  %v152_v21 = vrot.slane %v151_v17, 1  ;;  %v146_v24 = vadd.f32 %v145_v16, %v144_v12 }
  0x5f   :  { %v179_v23 = vsel %vm88_vm6, %v176_v19, %v169_v18  ;;  %v153_v25 = vadd.f32 %v152_v21, %v151_v17 }
  0x60   :  { %v181_v26 = vadd.f32 %v179_v23, %v162_v22 }
  0x61   :  { %v156_v28 = vsel %vm88_vm6, %v153_v25, %v146_v24 }
  0x62   :  { %182 = vst.msk [vmem:[#allocation4] sm:$0x3] %vm48_vm0, %v181_v26  ;;  %v158_v29 = vadd.f32 %v156_v28, %v137_v27 }
  0x64   :  { %160 = vst.msk [vmem:[#allocation3] sm:$0x3] %vm48_vm0, %v158_v29 }
  0x69   :  { %v188_v30 = vld [vmem:[#allocation4] sm:$0x3] }
  0x6a   :  { %225 = vrcp.f32 %v188_v30 }
  0x6b   :  { %v187_v32 = vld [vmem:[#allocation3] sm:$0x3] }
  0x77   :  { %v226_v31 = vpop.eup %225 }
  0x78   :  { %v190_v33 = vmul.f32 %v226_v31, %v187_v32 }
  0x7a   :  { %191 = vst.msk [vmem:[#allocation12] sm:$0x3] %vm48_vm0, %v190_v33 }
  0x7b   :  { %278 = shalt.err (!%p275_p0)
}
  0x7c   :  { %201 = dma.vmem_to_hbm [thread:$0]  %s199_s2, 32, %s359_s3, [#allocation9]  }
  0x7d   :  { %291 = dma.done.wait [#allocation9], 32  }
  0x7e   :  { %292 = vsyncadd [#allocation9], 4294967264 }
  0x7f   :  { %205 = vsyncpa [#allocation8], 1 }
  0x80   :  { %206 = vsyncpa [#allocation11], 1 }
  0x81   :  { %207 = vsyncpa [#allocation9], 1 }

</bundles_post_ra>
